<compile_context>
chip_gen: v7x
topology: tpu7x:2x2x1
jax: 0.10.0
libtpu: 0.0.40
codegen_flags: <defaults>
</compile_context>

<pallas_src>
import numpy as np
import jax
import jax.numpy as jnp
from jax.experimental import pallas as pl
from jax.experimental.pallas import tpu as pltpu


# ----------------------------------------------------------------------------
# Fused Down kernel: maxpool + (conv3x3 + folded BN + ReLU) x 2, whole batch
# in one invocation.  Activations are row-flattened: lane axis = W*C.
# ----------------------------------------------------------------------------
def make_down_kernel(N, Hp, Wp, Cin, Cout):
    R = N * (Hp + 2)          # padded scratch rows (Hp rows + 2 pad rows/img)
    L1 = (Wp + 2) * Cin       # padded lane width of conv1 input
    L2 = (Wp + 2) * Cout      # padded lane width of conv2 input
    WCI = Wp * Cin
    WCO = Wp * Cout

    def kernel(x_ref, w1_ref, t1_ref, w2_ref, t2_ref, o_ref,
               pad1_ref, pad2_ref):
        # Zero the padded scratches ONCE per call (single fused invocation,
        # so this is not per-grid-step work).  Interiors are overwritten
        # below; at these sizes the scratches are only a handful of vregs.
        pad1_ref[...] = jnp.zeros((R, L1), jnp.float32)
        pad2_ref[...] = jnp.zeros((R, L2), jnp.float32)

        # ------------------------------------------------------------------
        # MaxPool2d(2): the wrapper's single layout transpose exposes the 2x2
        # window parity as two leading dims, so pooling is 3 VPU maxes per
        # image -- no selection matmuls, no strided / lane-offset slicing.
        # Pooled rows are scattered straight into conv1's padded scratch.
        # ------------------------------------------------------------------
        for n in range(N):
            r0 = n * (Hp + 2)
            p = jnp.maximum(
                jnp.maximum(x_ref[n, 0, 0, :, :], x_ref[n, 0, 1, :, :]),
                jnp.maximum(x_ref[n, 1, 0, :, :], x_ref[n, 1, 1, :, :]))
            pad1_ref[r0 + 1:r0 + 1 + Hp, Cin:Cin + WCI] = p

        # ------------------------------------------------------------------
        # conv1 3x3 (pad=1) + folded BN scale/shift + ReLU.
        # The kw shift and BN scale live in the banded weight, so the LHS of
        # each dot is a plain full-width row slice of the padded scratch:
        # 3 accumulated dots with K = (Wp+2)*Cin, no lane concat.
        # ------------------------------------------------------------------
        h1 = jnp.dot(pad1_ref[0:R - 2, :], w1_ref[0, :, :],
                     preferred_element_type=jnp.float32)
        h1 = h1 + jnp.dot(pad1_ref[1:R - 1, :], w1_ref[1, :, :],
                          preferred_element_type=jnp.float32)
        h1 = h1 + jnp.dot(pad1_ref[2:R, :], w1_ref[2, :, :],
                          preferred_element_type=jnp.float32)
        h1 = jnp.maximum(h1 + t1_ref[...], 0.0)           # (R-2, Wp*Cout)

        # Scatter the valid rows of h1 into conv2's padded scratch; the rows
        # centred on inter-image padding are simply never copied, so the
        # zero borders of pad2 stay intact.
        for n in range(N):
            r0 = n * (Hp + 2)
            pad2_ref[r0 + 1:r0 + 1 + Hp, Cout:Cout + WCO] = h1[r0:r0 + Hp, :]

        # ------------------------------------------------------------------
        # conv2 3x3 (pad=1) + folded BN scale/shift + ReLU.
        # ------------------------------------------------------------------
        y = jnp.dot(pad2_ref[0:R - 2, :], w2_ref[0, :, :],
                    preferred_element_type=jnp.float32)
        y = y + jnp.dot(pad2_ref[1:R - 1, :], w2_ref[1, :, :],
                        preferred_element_type=jnp.float32)
        y = y + jnp.dot(pad2_ref[2:R, :], w2_ref[2, :, :],
                        preferred_element_type=jnp.float32)
        y = jnp.maximum(y + t2_ref[...], 0.0)              # (R-2, Wp*Cout)

        # Lane-dense per-image stores (Wp*Cout == 128 at the demo sizes).
        for n in range(N):
            r0 = n * (Hp + 2)
            o_ref[n, :, :] = y[r0:r0 + Hp, :].astype(o_ref.dtype)

    return kernel


# ----------------------------------------------------------------------------
# Param prep (runs once): BN folding into weight/shift, banded conv-weight
# expansion over the zero-padded row-flattened lane layout.
# ----------------------------------------------------------------------------
def build_banded_weight(w_oihw, bn_scale, Wp):
    """Fold the kw (column) shift of a 3x3 conv AND the BatchNorm scale into a
    banded matrix over the zero-padded lane layout.

    Returns (3, (Wp+2)*Cin, Wp*Cout) with
      W[kh][(wo+kw)*Cin + ci, wo*Cout + co] = w[co, ci, kh, kw] * s[co]
    so that out[h] = sum_kh pad[h+kh, :] @ W[kh].
    """
    w = np.asarray(w_oihw, np.float32) * \
        np.asarray(bn_scale, np.float32)[:, None, None, None]
    cout, cin, KH, KW = w.shape
    L = (Wp + 2) * cin
    wb = np.zeros((KH, L, Wp * cout), np.float32)
    for kh in range(KH):
        for kw in range(KW):
            blk = w[:, :, kh, kw].T                       # (cin, cout)
            for wo in range(Wp):
                r0 = (wo + kw) * cin
                wb[kh, r0:r0 + cin, wo * cout:(wo + 1) * cout] = blk
    return jnp.asarray(wb)


def prepare_params(params, H, W, eps=1e-5):
    del H
    Wp = W // 2
    cout = params["w1"].shape[0]

    s1 = np.asarray(params["gamma1"]) / np.sqrt(np.asarray(params["var1"]) + eps)
    t1 = (np.asarray(params["b1"]) - np.asarray(params["mean1"])) * s1 \
        + np.asarray(params["beta1"])
    s2 = np.asarray(params["gamma2"]) / np.sqrt(np.asarray(params["var2"]) + eps)
    t2 = (np.asarray(params["b2"]) - np.asarray(params["mean2"])) * s2 \
        + np.asarray(params["beta2"])

    return {
        "w1": build_banded_weight(params["w1"], s1, Wp),   # (3,(Wp+2)Cin,WpCout)
        "t1": jnp.asarray(np.tile(t1, Wp).reshape(1, Wp * cout), jnp.float32),
        "w2": build_banded_weight(params["w2"], s2, Wp),   # (3,(Wp+2)Cout,WpCout)
        "t2": jnp.asarray(np.tile(t2, Wp).reshape(1, Wp * cout), jnp.float32),
    }


# ----------------------------------------------------------------------------
# Forward wrapper: NCHW (PyTorch) boundary, single fused pallas_call.
# ----------------------------------------------------------------------------
def down_forward(x_nchw, prep):
    N, Cin, H, W = x_nchw.shape
    assert H % 2 == 0 and W % 2 == 0
    Hp, Wp = H // 2, W // 2
    Cout = prep["t1"].shape[1] // Wp
    R = N * (Hp + 2)
    L1 = (Wp + 2) * Cin
    L2 = (Wp + 2) * Cout

    # One XLA transpose at the PyTorch NCHW boundary: expose the 2x2 pooling
    # parity and flatten each row onto the lane axis:
    # (N, Cin, H, W) -> (N, row_par, col_par, Hp, Wp*Cin).
    x_split = jnp.transpose(
        x_nchw.astype(jnp.float32).reshape(N, Cin, Hp, 2, Wp, 2),
        (0, 3, 5, 2, 4, 1)).reshape(N, 2, 2, Hp, Wp * Cin)

    out_flat = pl.pallas_call(
        make_down_kernel(N, Hp, Wp, Cin, Cout),
        out_shape=jax.ShapeDtypeStruct((N, Hp, Wp * Cout), jnp.float32),
        grid=(1,),
        in_specs=[
            pl.BlockSpec((N, 2, 2, Hp, Wp * Cin), lambda i: (0, 0, 0, 0, 0)),
            pl.BlockSpec((3, L1, Wp * Cout), lambda i: (0, 0, 0)),
            pl.BlockSpec((1, Wp * Cout), lambda i: (0, 0)),
            pl.BlockSpec((3, L2, Wp * Cout), lambda i: (0, 0, 0)),
            pl.BlockSpec((1, Wp * Cout), lambda i: (0, 0)),
        ],
        out_specs=pl.BlockSpec((N, Hp, Wp * Cout), lambda i: (0, 0, 0)),
        scratch_shapes=[
            pltpu.VMEM((R, L1), jnp.float32),   # zero-padded pooled activations
            pltpu.VMEM((R, L2), jnp.float32),   # zero-padded conv1 activations
        ],
    )(x_split, prep["w1"], prep["t1"], prep["w2"], prep["t2"])

    out = out_flat.reshape(N, Hp, Wp, Cout)
    return jnp.transpose(out, (0, 3, 1, 2))      # back to NCHW


# ----------------------------------------------------------------------------
# Pure-JAX reference (PyTorch eval semantics, f32 conv path) + param init.
# ----------------------------------------------------------------------------
def down_ref(x, p, eps=1e-5):
    N, C, H, W = x.shape
    pooled = jnp.max(x.reshape(N, C, H // 2, 2, W // 2, 2), axis=(3, 5))

    def conv_bn_relu(inp, w, b, gamma, beta, mean, var):
        out = jax.lax.conv_general_dilated(
            inp, w, window_strides=(1, 1), padding=((1, 1), (1, 1)),
            dimension_numbers=("NCHW", "OIHW", "NCHW"),
            precision=jax.lax.Precision.HIGHEST)
        out = out + b[None, :, None, None]
        out = (out - mean[None, :, None, None]) * (
            gamma[None, :, None, None]
            / jnp.sqrt(var[None, :, None, None] + eps))
        out = out + beta[None, :, None, None]
        return jnp.maximum(out, 0.0)

    h = conv_bn_relu(pooled, p["w1"], p["b1"], p["gamma1"], p["beta1"],
                     p["mean1"], p["var1"])
    return conv_bn_relu(h, p["w2"], p["b2"], p["gamma2"], p["beta2"],
                        p["mean2"], p["var2"])


def init_params(key, cin, cout):
    ks = jax.random.split(key, 12)
    return {
        # PyTorch Conv2d layout (OIHW)
        "w1": 0.1 * jax.random.normal(ks[0], (cout, cin, 3, 3), jnp.float32),
        "b1": 0.1 * jax.random.normal(ks[1], (cout,), jnp.float32),
        "gamma1": 1.0 + 0.05 * jax.random.normal(ks[2], (cout,), jnp.float32),
        "beta1": 0.05 * jax.random.normal(ks[3], (cout,), jnp.float32),
        "mean1": 0.1 * jax.random.normal(ks[4], (cout,), jnp.float32),
        "var1": 1.0 + 0.2 * jax.random.uniform(ks[5], (cout,), jnp.float32),
        "w2": 0.1 * jax.random.normal(ks[6], (cout, cout, 3, 3), jnp.float32),
        "b2": 0.1 * jax.random.normal(ks[7], (cout,), jnp.float32),
        "gamma2": 1.0 + 0.05 * jax.random.normal(ks[8], (cout,), jnp.float32),
        "beta2": 0.05 * jax.random.normal(ks[9], (cout,), jnp.float32),
        "mean2": 0.1 * jax.random.normal(ks[10], (cout,), jnp.float32),
        "var2": 1.0 + 0.2 * jax.random.uniform(ks[11], (cout,), jnp.float32),
    }


if __name__ == "__main__":
    # Down(in_channels=4, out_channels=8); 32x32 input so the DoubleConv runs
    # at 16x16 and each output row is 16*8 = 128 lanes (fully lane-dense).
    N, CIN, COUT = 2, 4, 8
    H = W = 32

    key = jax.random.PRNGKey(0)
    kx, kp = jax.random.split(key)
    x = jax.random.normal(kx, (N, CIN, H, W), jnp.float32)   # NCHW like PyTorch

    params = init_params(kp, CIN, COUT)
    prep = prepare_params(params, H, W)

    out = jax.block_until_ready(down_forward(x, prep))
    assert out.shape == (N, COUT, H // 2, W // 2), out.shape

    ref = jax.block_until_ready(down_ref(x, params))
    max_err = float(jnp.max(jnp.abs(out - ref)))
    # Conv dots run at default MXU precision (bf16 inputs, f32 accumulation)
    # per the perf feedback, so allow bf16-level deviation from the f32-path
    # reference (typical max-abs diff is ~1e-2 at these magnitudes).
    assert max_err < 1e-1, f"max abs error vs reference = {max_err}"
    print("KERNEL_OK")
</pallas_src>

<mosaic_0001>
module attributes {stable_mosaic.version = 11 : i64} {
  func.func @kernel(%arg0: i32, %arg1: memref<2x2x2x16x64xf32, #tpu.memory_space<vmem>>, %arg2: memref<3x72x128xf32, #tpu.memory_space<vmem>>, %arg3: memref<1x128xf32, #tpu.memory_space<vmem>>, %arg4: memref<3x144x128xf32, #tpu.memory_space<vmem>>, %arg5: memref<1x128xf32, #tpu.memory_space<vmem>>, %arg6: memref<2x16x128xf32, #tpu.memory_space<vmem>>, %arg7: memref<36x72xf32, #tpu.memory_space<vmem>>, %arg8: memref<36x144xf32, #tpu.memory_space<vmem>>) attributes {dimension_semantics = [#tpu.dimension_semantics<arbitrary>], iteration_bounds = array<i64: 1>, scalar_prefetch = 0 : i64, scratch_operands = 2 : i64, tpu.core_type = #tpu.core_type<tc>, window_params = [{pipeline_mode = #tpu.pipeline_mode<synchronous>, transform_indices = @transform_0, window_bounds = array<i64: 2, 2, 2, 16, 64>}, {pipeline_mode = #tpu.pipeline_mode<synchronous>, transform_indices = @transform_1, window_bounds = array<i64: 3, 72, 128>}, {pipeline_mode = #tpu.pipeline_mode<synchronous>, transform_indices = @transform_2, window_bounds = array<i64: 1, 128>}, {pipeline_mode = #tpu.pipeline_mode<synchronous>, transform_indices = @transform_3, window_bounds = array<i64: 3, 144, 128>}, {pipeline_mode = #tpu.pipeline_mode<synchronous>, transform_indices = @transform_4, window_bounds = array<i64: 1, 128>}, {pipeline_mode = #tpu.pipeline_mode<synchronous>, transform_indices = @transform_5, window_bounds = array<i64: 2, 16, 128>}]} {
    %cst = arith.constant 0.000000e+00 : f32
    %0 = vector.broadcast %cst : f32 to vector<36x72xf32>
    %c0 = arith.constant 0 : index
    %c0_0 = arith.constant 0 : index
    %1 = vector.load %arg7[%c0, %c0_0] : memref<36x72xf32, #tpu.memory_space<vmem>>, vector<36x72xf32>
    tpu.vector_store %arg7[%c0, %c0_0], %0 {strides = array<i32>} : memref<36x72xf32, #tpu.memory_space<vmem>>, vector<36x72xf32>,
    %cst_1 = arith.constant 0.000000e+00 : f32
    %2 = vector.broadcast %cst_1 : f32 to vector<36x144xf32>
    %c0_2 = arith.constant 0 : index
    %c0_3 = arith.constant 0 : index
    %3 = vector.load %arg8[%c0_2, %c0_3] : memref<36x144xf32, #tpu.memory_space<vmem>>, vector<36x144xf32>
    tpu.vector_store %arg8[%c0_2, %c0_3], %2 {strides = array<i32>} : memref<36x144xf32, #tpu.memory_space<vmem>>, vector<36x144xf32>,
    %c0_4 = arith.constant 0 : index
    %c0_5 = arith.constant 0 : index
    %c0_6 = arith.constant 0 : index
    %c0_7 = arith.constant 0 : index
    %c0_8 = arith.constant 0 : index
    %4 = vector.load %arg1[%c0_4, %c0_5, %c0_6, %c0_7, %c0_8] : memref<2x2x2x16x64xf32, #tpu.memory_space<vmem>>, vector<1x1x1x16x64xf32>
    %5 = vector.shape_cast %4 : vector<1x1x1x16x64xf32> to vector<16x64xf32>
    %c0_9 = arith.constant 0 : index
    %c0_10 = arith.constant 0 : index
    %c1 = arith.constant 1 : index
    %c0_11 = arith.constant 0 : index
    %c0_12 = arith.constant 0 : index
    %6 = vector.load %arg1[%c0_9, %c0_10, %c1, %c0_11, %c0_12] : memref<2x2x2x16x64xf32, #tpu.memory_space<vmem>>, vector<1x1x1x16x64xf32>
    %7 = vector.shape_cast %6 : vector<1x1x1x16x64xf32> to vector<16x64xf32>
    %8 = arith.maximumf %5, %7 : vector<16x64xf32>
    %c0_13 = arith.constant 0 : index
    %c1_14 = arith.constant 1 : index
    %c0_15 = arith.constant 0 : index
    %c0_16 = arith.constant 0 : index
    %c0_17 = arith.constant 0 : index
    %9 = vector.load %arg1[%c0_13, %c1_14, %c0_15, %c0_16, %c0_17] : memref<2x2x2x16x64xf32, #tpu.memory_space<vmem>>, vector<1x1x1x16x64xf32>
    %10 = vector.shape_cast %9 : vector<1x1x1x16x64xf32> to vector<16x64xf32>
    %c0_18 = arith.constant 0 : index
    %c1_19 = arith.constant 1 : index
    %c1_20 = arith.constant 1 : index
    %c0_21 = arith.constant 0 : index
    %c0_22 = arith.constant 0 : index
    %11 = vector.load %arg1[%c0_18, %c1_19, %c1_20, %c0_21, %c0_22] : memref<2x2x2x16x64xf32, #tpu.memory_space<vmem>>, vector<1x1x1x16x64xf32>
    %12 = vector.shape_cast %11 : vector<1x1x1x16x64xf32> to vector<16x64xf32>
    %13 = arith.maximumf %10, %12 : vector<16x64xf32>
    %14 = arith.maximumf %8, %13 : vector<16x64xf32>
    %c1_23 = arith.constant 1 : index
    %c4 = arith.constant 4 : index
    %15 = vector.load %arg7[%c1_23, %c4] : memref<36x72xf32, #tpu.memory_space<vmem>>, vector<16x64xf32>
    tpu.vector_store %arg7[%c1_23, %c4], %14 {strides = array<i32>} : memref<36x72xf32, #tpu.memory_space<vmem>>, vector<16x64xf32>,
    %c1_24 = arith.constant 1 : index
    %c0_25 = arith.constant 0 : index
    %c0_26 = arith.constant 0 : index
    %c0_27 = arith.constant 0 : index
    %c0_28 = arith.constant 0 : index
    %16 = vector.load %arg1[%c1_24, %c0_25, %c0_26, %c0_27, %c0_28] : memref<2x2x2x16x64xf32, #tpu.memory_space<vmem>>, vector<1x1x1x16x64xf32>
    %17 = vector.shape_cast %16 : vector<1x1x1x16x64xf32> to vector<16x64xf32>
    %c1_29 = arith.constant 1 : index
    %c0_30 = arith.constant 0 : index
    %c1_31 = arith.constant 1 : index
    %c0_32 = arith.constant 0 : index
    %c0_33 = arith.constant 0 : index
    %18 = vector.load %arg1[%c1_29, %c0_30, %c1_31, %c0_32, %c0_33] : memref<2x2x2x16x64xf32, #tpu.memory_space<vmem>>, vector<1x1x1x16x64xf32>
    %19 = vector.shape_cast %18 : vector<1x1x1x16x64xf32> to vector<16x64xf32>
    %20 = arith.maximumf %17, %19 : vector<16x64xf32>
    %c1_34 = arith.constant 1 : index
    %c1_35 = arith.constant 1 : index
    %c0_36 = arith.constant 0 : index
    %c0_37 = arith.constant 0 : index
    %c0_38 = arith.constant 0 : index
    %21 = vector.load %arg1[%c1_34, %c1_35, %c0_36, %c0_37, %c0_38] : memref<2x2x2x16x64xf32, #tpu.memory_space<vmem>>, vector<1x1x1x16x64xf32>
    %22 = vector.shape_cast %21 : vector<1x1x1x16x64xf32> to vector<16x64xf32>
    %c1_39 = arith.constant 1 : index
    %c1_40 = arith.constant 1 : index
    %c1_41 = arith.constant 1 : index
    %c0_42 = arith.constant 0 : index
    %c0_43 = arith.constant 0 : index
    %23 = vector.load %arg1[%c1_39, %c1_40, %c1_41, %c0_42, %c0_43] : memref<2x2x2x16x64xf32, #tpu.memory_space<vmem>>, vector<1x1x1x16x64xf32>
    %24 = vector.shape_cast %23 : vector<1x1x1x16x64xf32> to vector<16x64xf32>
    %25 = arith.maximumf %22, %24 : vector<16x64xf32>
    %26 = arith.maximumf %20, %25 : vector<16x64xf32>
    %c19 = arith.constant 19 : index
    %c4_44 = arith.constant 4 : index
    %27 = vector.load %arg7[%c19, %c4_44] : memref<36x72xf32, #tpu.memory_space<vmem>>, vector<16x64xf32>
    tpu.vector_store %arg7[%c19, %c4_44], %26 {strides = array<i32>} : memref<36x72xf32, #tpu.memory_space<vmem>>, vector<16x64xf32>,
    %c0_45 = arith.constant 0 : index
    %c0_46 = arith.constant 0 : index
    %28 = vector.load %arg7[%c0_45, %c0_46] : memref<36x72xf32, #tpu.memory_space<vmem>>, vector<34x72xf32>
    %c0_47 = arith.constant 0 : index
    %c0_48 = arith.constant 0 : index
    %c0_49 = arith.constant 0 : index
    %29 = vector.load %arg2[%c0_47, %c0_48, %c0_49] : memref<3x72x128xf32, #tpu.memory_space<vmem>>, vector<1x72x128xf32>
    %30 = vector.shape_cast %29 : vector<1x72x128xf32> to vector<72x128xf32>
    %cst_50 = arith.constant dense<0.000000e+00> : vector<34x128xf32>
    %31 = tpu.matmul %28, %30, %cst_50 {dimension_numbers = #tpu.dot_dimension_numbers<[1], [0], [0], [1], [0, 0, 1, 1], [], []>} : vector<34x72xf32>, vector<72x128xf32>, vector<34x128xf32> -> vector<34x128xf32>
    %c1_51 = arith.constant 1 : index
    %c0_52 = arith.constant 0 : index
    %32 = vector.load %arg7[%c1_51, %c0_52] : memref<36x72xf32, #tpu.memory_space<vmem>>, vector<34x72xf32>
    %c1_53 = arith.constant 1 : index
    %c0_54 = arith.constant 0 : index
    %c0_55 = arith.constant 0 : index
    %33 = vector.load %arg2[%c1_53, %c0_54, %c0_55] : memref<3x72x128xf32, #tpu.memory_space<vmem>>, vector<1x72x128xf32>
    %34 = vector.shape_cast %33 : vector<1x72x128xf32> to vector<72x128xf32>
    %cst_56 = arith.constant dense<0.000000e+00> : vector<34x128xf32>
    %35 = tpu.matmul %32, %34, %cst_56 {dimension_numbers = #tpu.dot_dimension_numbers<[1], [0], [0], [1], [0, 0, 1, 1], [], []>} : vector<34x72xf32>, vector<72x128xf32>, vector<34x128xf32> -> vector<34x128xf32>
    %36 = arith.addf %31, %35 : vector<34x128xf32>
    %c2 = arith.constant 2 : index
    %c0_57 = arith.constant 0 : index
    %37 = vector.load %arg7[%c2, %c0_57] : memref<36x72xf32, #tpu.memory_space<vmem>>, vector<34x72xf32>
    %c2_58 = arith.constant 2 : index
    %c0_59 = arith.constant 0 : index
    %c0_60 = arith.constant 0 : index
    %38 = vector.load %arg2[%c2_58, %c0_59, %c0_60] : memref<3x72x128xf32, #tpu.memory_space<vmem>>, vector<1x72x128xf32>
    %39 = vector.shape_cast %38 : vector<1x72x128xf32> to vector<72x128xf32>
    %cst_61 = arith.constant dense<0.000000e+00> : vector<34x128xf32>
    %40 = tpu.matmul %37, %39, %cst_61 {dimension_numbers = #tpu.dot_dimension_numbers<[1], [0], [0], [1], [0, 0, 1, 1], [], []>} : vector<34x72xf32>, vector<72x128xf32>, vector<34x128xf32> -> vector<34x128xf32>
    %41 = arith.addf %36, %40 : vector<34x128xf32>
    %c0_62 = arith.constant 0 : index
    %c0_63 = arith.constant 0 : index
    %42 = vector.load %arg3[%c0_62, %c0_63] : memref<1x128xf32, #tpu.memory_space<vmem>>, vector<1x128xf32>
    %43 = vector.broadcast %42 : vector<1x128xf32> to vector<34x128xf32>
    %44 = arith.addf %41, %43 : vector<34x128xf32>
    %cst_64 = arith.constant 0.000000e+00 : f32
    %45 = vector.broadcast %cst_64 : f32 to vector<34x128xf32>
    %46 = arith.maximumf %44, %45 : vector<34x128xf32>
    %47 = vector.extract_strided_slice %46 {offsets = [0, 0], sizes = [16, 128], strides = [1, 1]} : vector<34x128xf32> to vector<16x128xf32>
    %c1_65 = arith.constant 1 : index
    %c8 = arith.constant 8 : index
    %48 = vector.load %arg8[%c1_65, %c8] : memref<36x144xf32, #tpu.memory_space<vmem>>, vector<16x128xf32>
    tpu.vector_store %arg8[%c1_65, %c8], %47 {strides = array<i32>} : memref<36x144xf32, #tpu.memory_space<vmem>>, vector<16x128xf32>,
    %49 = vector.extract_strided_slice %46 {offsets = [18, 0], sizes = [16, 128], strides = [1, 1]} : vector<34x128xf32> to vector<16x128xf32>
    %c19_66 = arith.constant 19 : index
    %c8_67 = arith.constant 8 : index
    %50 = vector.load %arg8[%c19_66, %c8_67] : memref<36x144xf32, #tpu.memory_space<vmem>>, vector<16x128xf32>
    tpu.vector_store %arg8[%c19_66, %c8_67], %49 {strides = array<i32>} : memref<36x144xf32, #tpu.memory_space<vmem>>, vector<16x128xf32>,
    %c0_68 = arith.constant 0 : index
    %c0_69 = arith.constant 0 : index
    %51 = vector.load %arg8[%c0_68, %c0_69] : memref<36x144xf32, #tpu.memory_space<vmem>>, vector<34x144xf32>
    %c0_70 = arith.constant 0 : index
    %c0_71 = arith.constant 0 : index
    %c0_72 = arith.constant 0 : index
    %52 = vector.load %arg4[%c0_70, %c0_71, %c0_72] : memref<3x144x128xf32, #tpu.memory_space<vmem>>, vector<1x144x128xf32>
    %53 = vector.shape_cast %52 : vector<1x144x128xf32> to vector<144x128xf32>
    %cst_73 = arith.constant dense<0.000000e+00> : vector<34x128xf32>
    %54 = tpu.matmul %51, %53, %cst_73 {dimension_numbers = #tpu.dot_dimension_numbers<[1], [0], [0], [1], [0, 0, 1, 1], [], []>} : vector<34x144xf32>, vector<144x128xf32>, vector<34x128xf32> -> vector<34x128xf32>
    %c1_74 = arith.constant 1 : index
    %c0_75 = arith.constant 0 : index
    %55 = vector.load %arg8[%c1_74, %c0_75] : memref<36x144xf32, #tpu.memory_space<vmem>>, vector<34x144xf32>
    %c1_76 = arith.constant 1 : index
    %c0_77 = arith.constant 0 : index
    %c0_78 = arith.constant 0 : index
    %56 = vector.load %arg4[%c1_76, %c0_77, %c0_78] : memref<3x144x128xf32, #tpu.memory_space<vmem>>, vector<1x144x128xf32>
    %57 = vector.shape_cast %56 : vector<1x144x128xf32> to vector<144x128xf32>
    %cst_79 = arith.constant dense<0.000000e+00> : vector<34x128xf32>
    %58 = tpu.matmul %55, %57, %cst_79 {dimension_numbers = #tpu.dot_dimension_numbers<[1], [0], [0], [1], [0, 0, 1, 1], [], []>} : vector<34x144xf32>, vector<144x128xf32>, vector<34x128xf32> -> vector<34x128xf32>
    %59 = arith.addf %54, %58 : vector<34x128xf32>
    %c2_80 = arith.constant 2 : index
    %c0_81 = arith.constant 0 : index
    %60 = vector.load %arg8[%c2_80, %c0_81] : memref<36x144xf32, #tpu.memory_space<vmem>>, vector<34x144xf32>
    %c2_82 = arith.constant 2 : index
    %c0_83 = arith.constant 0 : index
    %c0_84 = arith.constant 0 : index
    %61 = vector.load %arg4[%c2_82, %c0_83, %c0_84] : memref<3x144x128xf32, #tpu.memory_space<vmem>>, vector<1x144x128xf32>
    %62 = vector.shape_cast %61 : vector<1x144x128xf32> to vector<144x128xf32>
    %cst_85 = arith.constant dense<0.000000e+00> : vector<34x128xf32>
    %63 = tpu.matmul %60, %62, %cst_85 {dimension_numbers = #tpu.dot_dimension_numbers<[1], [0], [0], [1], [0, 0, 1, 1], [], []>} : vector<34x144xf32>, vector<144x128xf32>, vector<34x128xf32> -> vector<34x128xf32>
    %64 = arith.addf %59, %63 : vector<34x128xf32>
    %c0_86 = arith.constant 0 : index
    %c0_87 = arith.constant 0 : index
    %65 = vector.load %arg5[%c0_86, %c0_87] : memref<1x128xf32, #tpu.memory_space<vmem>>, vector<1x128xf32>
    %66 = vector.broadcast %65 : vector<1x128xf32> to vector<34x128xf32>
    %67 = arith.addf %64, %66 : vector<34x128xf32>
    %cst_88 = arith.constant 0.000000e+00 : f32
    %68 = vector.broadcast %cst_88 : f32 to vector<34x128xf32>
    %69 = arith.maximumf %67, %68 : vector<34x128xf32>
    %70 = vector.extract_strided_slice %69 {offsets = [0, 0], sizes = [16, 128], strides = [1, 1]} : vector<34x128xf32> to vector<16x128xf32>
    %c0_89 = arith.constant 0 : index
    %c0_90 = arith.constant 0 : index
    %c0_91 = arith.constant 0 : index
    %71 = vector.load %arg6[%c0_89, %c0_90, %c0_91] : memref<2x16x128xf32, #tpu.memory_space<vmem>>, vector<1x16x128xf32>
    %72 = vector.shape_cast %71 : vector<1x16x128xf32> to vector<16x128xf32>
    %73 = vector.shape_cast %70 : vector<16x128xf32> to vector<1x16x128xf32>
    tpu.vector_store %arg6[%c0_89, %c0_90, %c0_91], %73 {strides = array<i32>} : memref<2x16x128xf32, #tpu.memory_space<vmem>>, vector<1x16x128xf32>,
    %74 = vector.extract_strided_slice %69 {offsets = [18, 0], sizes = [16, 128], strides = [1, 1]} : vector<34x128xf32> to vector<16x128xf32>
    %c1_92 = arith.constant 1 : index
    %c0_93 = arith.constant 0 : index
    %c0_94 = arith.constant 0 : index
    %75 = vector.load %arg6[%c1_92, %c0_93, %c0_94] : memref<2x16x128xf32, #tpu.memory_space<vmem>>, vector<1x16x128xf32>
    %76 = vector.shape_cast %75 : vector<1x16x128xf32> to vector<16x128xf32>
    %77 = vector.shape_cast %74 : vector<16x128xf32> to vector<1x16x128xf32>
    tpu.vector_store %arg6[%c1_92, %c0_93, %c0_94], %77 {strides = array<i32>} : memref<2x16x128xf32, #tpu.memory_space<vmem>>, vector<1x16x128xf32>,
    return
  }
  func.func @transform_0(%arg0: i32) -> (i32, i32, i32, i32, i32) {
    %c0_i32 = arith.constant 0 : i32
    %c0_i32_0 = arith.constant 0 : i32
    %c0_i32_1 = arith.constant 0 : i32
    %c0_i32_2 = arith.constant 0 : i32
    %c0_i32_3 = arith.constant 0 : i32
    %c0_i32_4 = arith.constant 0 : i32
    return %c0_i32, %c0_i32_0, %c0_i32_1, %c0_i32_2, %c0_i32_3 : i32, i32, i32, i32, i32
  }
  func.func @transform_1(%arg0: i32) -> (i32, i32, i32) {
    %c0_i32 = arith.constant 0 : i32
    %c0_i32_0 = arith.constant 0 : i32
    %c0_i32_1 = arith.constant 0 : i32
    %c0_i32_2 = arith.constant 0 : i32
    return %c0_i32, %c0_i32_0, %c0_i32_1 : i32, i32, i32
  }
  func.func @transform_2(%arg0: i32) -> (i32, i32) {
    %c0_i32 = arith.constant 0 : i32
    %c0_i32_0 = arith.constant 0 : i32
    %c0_i32_1 = arith.constant 0 : i32
    return %c0_i32, %c0_i32_0 : i32, i32
  }
  func.func @transform_3(%arg0: i32) -> (i32, i32, i32) {
    %c0_i32 = arith.constant 0 : i32
    %c0_i32_0 = arith.constant 0 : i32
    %c0_i32_1 = arith.constant 0 : i32
    %c0_i32_2 = arith.constant 0 : i32
    return %c0_i32, %c0_i32_0, %c0_i32_1 : i32, i32, i32
  }
  func.func @transform_4(%arg0: i32) -> (i32, i32) {
    %c0_i32 = arith.constant 0 : i32
    %c0_i32_0 = arith.constant 0 : i32
    %c0_i32_1 = arith.constant 0 : i32
    return %c0_i32, %c0_i32_0 : i32, i32
  }
  func.func @transform_5(%arg0: i32) -> (i32, i32, i32) {
    %c0_i32 = arith.constant 0 : i32
    %c0_i32_0 = arith.constant 0 : i32
    %c0_i32_1 = arith.constant 0 : i32
    %c0_i32_2 = arith.constant 0 : i32
    return %c0_i32, %c0_i32_0, %c0_i32_1 : i32, i32, i32
  }
}

</mosaic_0001>

<bundles_post_ra>
// kernel: tpu_custom_call.1
= control target key start
LH: loop header
LB: loop body
LE: loop exit
PB: predicated region body
PF: predicated region fallthrough
CT: control target
= control target key end

     0   :  { %10 = vsyncpa [#allocation5], 0  ;;  %s1747_s0 = inlined_call_operand.hbm [shape: f32[2,2,2,16,64], index: 0, kind: input, shape index: {}]   ;;  %s1748_s1 = inlined_call_operand.hbm [shape: f32[3,72,128], index: 1, kind: input, shape index: {}]   ;;  %s1749_s2 = inlined_call_operand.vmem [shape: f32[1,128], index: 2, kind: input, shape index: {}]   ;;  %s1750_s3 = inlined_call_operand.hbm [shape: f32[3,144,128], index: 3, kind: input, shape index: {}]   ;;  %s1751_s4 = inlined_call_operand.vmem [shape: f32[1,128], index: 4, kind: input, shape index: {}]   ;;  %s1752_s5 = inlined_call_operand.hbm [shape: f32[2,16,128], index: 5, kind: output, shape index: {}]  }
   0x1   :  { %11 = vsyncpa [#allocation8], 0 }
   0x2   :  { %12 = vsyncpa [#allocation6], 0  ;;  %s1450_s18 = smov [#allocation7]   ;;  %s1451_s20 = smov [#allocation4]  }
   0x3   :  { %s30_s19 = sshll.u32 %s1450_s18, 4  ;;  %s18_s21 = sshll.u32 %s1451_s20, 4  ;;  %s31_s19 = int_to_ptr.vmem [resolvable:$true] %s30_s19  ;;  %s1490_s21 = int_to_ptr.vmem [resolvable:$true] %s18_s21 }
   0x4   :  { %s1356_s24 = scalar_lea.hbm %s1748_s1, 3456 }
   0x5   :  { %p1357_p0 = scmp.ne.s32.totalorder %s1748_s1, %s1356_s24  ;;  %p1360_p1 = scmp.lt.u32.totalorder %s1356_s24, %s1748_s1 }
   0x7   :  { %p1362_p2 = pnand %p1360_p1, %p1357_p0 }
   0x9   :  { %1365 = shalt.err (!%p1362_p2)
}
   0xa   :  { %s1366_s29 = scalar_lea.vmem %s31_s19, 3456  ;;  %p1371_p4 = scmp.lt.s32.totalorder %s31_s19, %s31_s19 }
   0xb   :  { %p1367_p3 = scmp.ne.s32.totalorder %s31_s19, %s1366_s29  ;;  %p1372_p5 = scmp.lt.s32.totalorder %s1366_s29, %s1366_s29 }
   0xd   :  { %p1373_p6 = por %p1372_p5, %p1371_p4 }
   0xf   :  { %p1374_p7 = pnand %p1373_p6, %p1367_p3 }
  0x11   :  { %1377 = shalt.err (!%p1374_p7)
}
  0x12   :  { %s1452_s30 = smov 128   ;;  %s1453_s6 = smov 8  }
  0x13   :  { %36 = dma.hbm_to_vmem [thread:$0]  %s1748_s1, 3456, %s31_s19, [#allocation8], %s1452_s30, %s1452_s30, %s1453_s6  }
  0x14   :  { %s1378_s11 = scalar_lea.hbm %s1747_s0, 2048 }
  0x15   :  { %p1379_p8 = scmp.ne.s32.totalorder %s1747_s0, %s1378_s11  ;;  %p1382_p9 = scmp.lt.u32.totalorder %s1378_s11, %s1747_s0 }
  0x17   :  { %p1384_p10 = pnand %p1382_p9, %p1379_p8 }
  0x19   :  { %1387 = shalt.err (!%p1384_p10)
}
  0x1a   :  { %s1388_s16 = scalar_lea.vmem %s1490_s21, 2048  ;;  %p1393_p12 = scmp.lt.s32.totalorder %s1490_s21, %s1490_s21 }
  0x1b   :  { %p1389_p11 = scmp.ne.s32.totalorder %s1490_s21, %s1388_s16  ;;  %p1394_p13 = scmp.lt.s32.totalorder %s1388_s16, %s1388_s16 }
  0x1d   :  { %p1395_p0 = por %p1394_p13, %p1393_p12 }
  0x1f   :  { %p1396_p1 = pnand %p1395_p0, %p1389_p11 }
  0x21   :  { %1399 = shalt.err (!%p1396_p1)
}
  0x22   :  { %24 = dma.hbm_to_vmem [thread:$0]  %s1747_s0, 2048, %s1490_s21, [#allocation5], %s1452_s30, %s1452_s30, %s1453_s6  }
  0x23   :  { %s1454_s18 = smov [#allocation9]   ;;  %s1400_s23 = scalar_lea.hbm %s1750_s3, 6912 }
  0x24   :  { %s44_s19 = sshll.u32 %s1454_s18, 4  ;;  %p1401_p2 = scmp.ne.s32.totalorder %s1750_s3, %s1400_s23  ;;  %s45_s19 = int_to_ptr.vmem [resolvable:$true] %s44_s19 }
  0x25   :  { %p1404_p3 = scmp.lt.u32.totalorder %s1400_s23, %s1750_s3 }
  0x27   :  { %p1406_p4 = pnand %p1404_p3, %p1401_p2 }
  0x29   :  { %1409 = shalt.err (!%p1406_p4)
}
  0x2a   :  { %s1410_s28 = scalar_lea.vmem %s45_s19, 6912  ;;  %p1415_p6 = scmp.lt.s32.totalorder %s45_s19, %s45_s19 }
  0x2b   :  { %p1411_p5 = scmp.ne.s32.totalorder %s45_s19, %s1410_s28  ;;  %p1416_p7 = scmp.lt.s32.totalorder %s1410_s28, %s1410_s28 }
  0x2d   :  { %p1417_p8 = por %p1416_p7, %p1415_p6 }
  0x2f   :  { %p1418_p9 = pnand %p1417_p8, %p1411_p5 }
  0x31   :  { %1421 = shalt.err (!%p1418_p9)
}
  0x32   :  { %50 = dma.hbm_to_vmem [thread:$0]  %s1750_s3, 6912, %s45_s19, [#allocation8], %s1452_s30, %s1452_s30, %s1453_s6  }
  0x33   :  { %1444 = dma.done.wait [#allocation5], 2048  }
  0x34   :  { %1445 = vsyncadd [#allocation5], 4294965248 }
  0x35   :  { %1446 = dma.done.wait [#allocation8], 10368  }
  0x36   :  { %1447 = vsyncadd [#allocation8], 4294956928  ;;  %vm62_vm0 = vcmask 588800   ;;  %v1455_v0 = vmov 0.0|0.0   ;;  %v1456_v1 = vmov 0.0   ;;  %vm67_vm1 = vcmask 584704  }
  0x37   :  { %1229 = vmatprep.subr.bf16.mxu0 %v1455_v0  ;;  %1241 = vmatprep.subr.bf16.mxu1 %v1455_v0  ;;  %63 = vst.msk [vmem:[#allocation2] sm:$0xff] %vm62_vm0, %v1456_v1  ;;  %64 = vst.msk [vmem:[#allocation2 + $0x8] sm:$0xff] %vm62_vm0, %v1456_v1  ;;  %vm1457_vm2 = vmmov 0   ;;  %v81_v2 = vld [vmem:[#allocation4] sm:$0xff]  ;;  %v84_v3 = vld [vmem:[#allocation4 + $0x10] sm:$0xff]  ;;  %s1458_s3 = smov 4  }
  0x38   :  { %65 = vst.msk [vmem:[#allocation2 + $0x10] sm:$0xff] %vm62_vm0, %v1456_v1  ;;  %66 = vst.msk [vmem:[#allocation2 + $0x18] sm:$0xff] %vm62_vm0, %v1456_v1  ;;  %1148 = vmatprep.mubr.msk.f32.mxu0 %vm1457_vm2, %v1456_v1  ;;  %1181 = vmatprep.mubr.msk.f32.mxu1 %vm1457_vm2, %v1456_v1  ;;  %v89_v4 = vld [vmem:[#allocation4 + $0x20] sm:$0xff]  ;;  %v86_v5 = vmax.f32 %v81_v2, %v84_v3  ;;  %v92_v6 = vld [vmem:[#allocation4 + $0x30] sm:$0xff]  ;;  %vm106_vm3 = vcmask 556064   ;;  %vm70_vm4 = vcmask 130048  }
  0x39   :  { %69 = vst [vmem:[#allocation3] sm:$0xff] %v1456_v1  ;;  %72 = vst [vmem:[#allocation3 + $0x10] sm:$0xff] %v1456_v1  ;;  %v110_v7 = vld [vmem:[#allocation4 + $0x40] sm:$0xff]  ;;  %v113_v8 = vld [vmem:[#allocation4 + $0x50] sm:$0xff]  ;;  %v94_v9 = vmax.f32 %v89_v4, %v92_v6  ;;  %vm520_vm5 = vcmask 1040384   ;;  %vm79_vm6 = vcmask 125952  }
  0x3a   :  { %74 = vst [vmem:[#allocation3 + $0x20] sm:$0xff] %v1456_v1  ;;  %76 = vst [vmem:[#allocation3 + $0x30] sm:$0xff] %v1456_v1  ;;  %v115_v10 = vmax.f32 %v110_v7, %v113_v8  ;;  %v118_v11 = vld [vmem:[#allocation4 + $0x60] sm:$0xff]  ;;  %v121_v12 = vld [vmem:[#allocation4 + $0x70] sm:$0xff]  ;;  %vm533_vm7 = vcmask 1047617   ;;  %vm535_vm8 = vcmask 64513  }
  0x3b   :  { %78 = vst [vmem:[#allocation3 + $0x40] sm:$0xf] %v1456_v1  ;;  %68 = vst.msk [vmem:[#allocation2 + $0x20] sm:$0xf] %vm67_vm1, %v1456_v1  ;;  %v82_v13 = vld [vmem:[#allocation4 + $0x8] sm:$0xff]  ;;  %v123_v14 = vmax.f32 %v118_v11, %v121_v12  ;;  %v85_v15 = vld [vmem:[#allocation4 + $0x18] sm:$0xff]  ;;  %v96_v18 = vmax.f32 %v86_v5, %v94_v9 }
  0x3c   :  { %v90_v16 = vld [vmem:[#allocation4 + $0x28] sm:$0xff]  ;;  %v93_v17 = vld [vmem:[#allocation4 + $0x38] sm:$0xff]  ;;  %v87_v19 = vmax.f32 %v82_v13, %v85_v15  ;;  %v158_v28 = vld [vmem:[#allocation7 + $0x50] sm:$0xff]  ;;  %71 = vst.msk [vmem:[#allocation3 + $0x8] sm:$0xff] %vm70_vm4, %v1456_v1  ;;  %vm541_vm9 = vcmask 1040448   ;;  %vm543_vm10 = vcmask 57344  }
  0x3d   :  { %v95_v20 = vmax.f32 %v90_v16, %v93_v17  ;;  %v111_v21 = vld [vmem:[#allocation4 + $0x48] sm:$0xff]  ;;  %v114_v22 = vld [vmem:[#allocation4 + $0x58] sm:$0xff]  ;;  %v125_v24 = vmax.f32 %v115_v10, %v123_v14  ;;  %100 = vrot.lane.b32.xlu0 %v96_v18, %s1458_s3  ;;  %v142_v32 = vld [vmem:[#allocation7] sm:$0xff]  ;;  %73 = vst.msk [vmem:[#allocation3 + $0x18] sm:$0xff] %vm70_vm4, %v1456_v1  ;;  %vm537_vm11 = vcmask 1047616   ;;  %vm539_vm12 = vcmask 64512  }
  0x3e   :  { %v119_v23 = vld [vmem:[#allocation4 + $0x68] sm:$0xff]  ;;  %v116_v25 = vmax.f32 %v111_v21, %v114_v22  ;;  %v122_v26 = vld [vmem:[#allocation4 + $0x78] sm:$0xff]  ;;  %v160_v36 = vld [vmem:[#allocation7 + $0x60] sm:$0xff]  ;;  %75 = vst.msk [vmem:[#allocation3 + $0x28] sm:$0xff] %vm70_vm4, %v1456_v1  ;;  %vm562_vm13 = vcmask 1047619   ;;  %vm564_vm14 = vcmask 64515  }
  0x3f   :  { %v157_v27 = vld [vmem:[#allocation7 + $0x48] sm:$0xff]  ;;  %v97_v29 = vmax.f32 %v87_v19, %v95_v20  ;;  %v124_v30 = vmax.f32 %v119_v23, %v122_v26  ;;  %v159_v34 = vld [vmem:[#allocation7 + $0x58] sm:$0xff]  ;;  %129 = vrot.lane.b32.xlu1 %v125_v24, %s1458_s3  ;;  %v144_v37 = vld [vmem:[#allocation7 + $0x10] sm:$0xff]  ;;  %77 = vst.msk [vmem:[#allocation3 + $0x38] sm:$0xff] %vm70_vm4, %v1456_v1  ;;  %vm633_vm15 = vcmask 1046528   ;;  %vm570_vm1 = vcmask 59392  }
  0x40   :  { %v1230_v31 = vpack.c.bf16 %v158_v28, %v157_v27  ;;  %v143_v33 = vld [vmem:[#allocation7 + $0x8] sm:$0xff]  ;;  %v145_v38 = vld [vmem:[#allocation7 + $0x18] sm:$0xff]  ;;  %v1233_v40 = vpack.c.bf16 %v160_v36, %v159_v34  ;;  %v162_v43 = vld [vmem:[#allocation7 + $0x70] sm:$0xff]  ;;  %80 = vst.msk [vmem:[#allocation3 + $0x48] sm:$0xf] %vm79_vm6, %v1456_v1 }
  0x41   :  { %v1242_v35 = vpack.c.bf16 %v143_v33, %v142_v32  ;;  %v126_v39 = vmax.f32 %v116_v25, %v124_v30  ;;  %v1245_v41 = vpack.c.bf16 %v145_v38, %v144_v37  ;;  %v161_v42 = vld [vmem:[#allocation7 + $0x68] sm:$0xff]  ;;  %102 = vrot.lane.b32.xlu0 %v97_v29, %s1458_s3  ;;  %v146_v44 = vld [vmem:[#allocation7 + $0x20] sm:$0xff]  ;;  %v163_v48 = vld [vmem:[#allocation7 + $0x78] sm:$0xff] }
  0x42   :  { %1231 = vmatpush3.bf16.msra.mxu0 %v1230_v31  ;;  %v147_v45 = vld [vmem:[#allocation7 + $0x28] sm:$0xff]  ;;  %v1236_v46 = vpack.c.bf16 %v162_v43, %v161_v42  ;;  %v164_v49 = vld [vmem:[#allocation7 + $0x80] sm:$0xff]  ;;  %v148_v50 = vld [vmem:[#allocation7 + $0x30] sm:$0xff] }
  0x43   :  { %1243 = vmatpush3.bf16.msra.mxu1 %v1242_v35  ;;  %1232 = vmatprep.subr.bf16.mxu0 %v1455_v0  ;;  %v1248_v47 = vpack.c.bf16 %v147_v45, %v146_v44  ;;  %v149_v51 = vld [vmem:[#allocation7 + $0x38] sm:$0xff]  ;;  %v1239_v52 = vpack.c.bf16 %v164_v49, %v163_v48  ;;  %v165_v54 = vld [vmem:[#allocation7 + $0x88] sm:$0xff]  ;;  %v150_v55 = vld [vmem:[#allocation7 + $0x40] sm:$0xff] }
  0x44   :  { %1244 = vmatprep.subr.bf16.mxu1 %v1455_v0  ;;  %131 = vrot.lane.b32.xlu1 %v126_v39, %s1458_s3  ;;  %v1251_v53 = vpack.c.bf16 %v149_v51, %v148_v50  ;;  %v382_v58 = vld [vmem:[#allocation7 + $0x90] sm:$0xff]  ;;  %v383_v59 = vld [vmem:[#allocation7 + $0x98] sm:$0xff]  ;;  %v384_v63 = vld [vmem:[#allocation7 + $0xa0] sm:$0xff] }
  0x45   :  { %v1254_v62 = vpack.c.bf16 %v383_v59, %v382_v58  ;;  %v385_v2 = vld [vmem:[#allocation7 + $0xa8] sm:$0xff]  ;;  %v386_v6 = vld [vmem:[#allocation7 + $0xb0] sm:$0xff]  ;;  %v387_v7 = vld [vmem:[#allocation7 + $0xb8] sm:$0xff] }
  0x46   :  { %1234 = vmatpush3.bf16.msra.mxu0 %v1233_v40  ;;  %v1257_v5 = vpack.c.bf16 %v385_v2, %v384_v63  ;;  %v1260_v11 = vpack.c.bf16 %v387_v7, %v386_v6  ;;  %v388_v12 = vld [vmem:[#allocation7 + $0xc0] sm:$0xff]  ;;  %v389_v13 = vld [vmem:[#allocation7 + $0xc8] sm:$0xff]  ;;  %v390_v18 = vld [vmem:[#allocation7 + $0xd0] sm:$0xff] }
  0x47   :  { %1246 = vmatpush3.bf16.msra.mxu1 %v1245_v41  ;;  %1235 = vmatprep.subr.bf16.mxu0 %v1455_v0  ;;  %v1263_v15 = vpack.c.bf16 %v389_v13, %v388_v12  ;;  %v582_v26 = vld [vmem:[#allocation9] sm:$0xff]  ;;  %v583_v27 = vld [vmem:[#allocation9 + $0x8] sm:$0xff]  ;;  %v584_v28 = vld [vmem:[#allocation9 + $0x10] sm:$0xff] }
  0x48   :  { %1247 = vmatprep.subr.bf16.mxu1 %v1455_v0  ;;  %v1293_v29 = vpack.c.bf16 %v583_v27, %v582_v26  ;;  %v585_v30 = vld [vmem:[#allocation9 + $0x18] sm:$0xff]  ;;  %v605_v31 = vld [vmem:[#allocation9 + $0x90] sm:$0xff]  ;;  %v607_v34 = vld [vmem:[#allocation9 + $0xa0] sm:$0xff] }
  0x49   :  { %v606_v32 = vld [vmem:[#allocation9 + $0x98] sm:$0xff]  ;;  %v1296_v35 = vpack.c.bf16 %v585_v30, %v584_v28  ;;  %v608_v36 = vld [vmem:[#allocation9 + $0xa8] sm:$0xff]  ;;  %v586_v37 = vld [vmem:[#allocation9 + $0x20] sm:$0xff] }
  0x4a   :  { %1237 = vmatpush3.bf16.msra.mxu0 %v1236_v46  ;;  %v1266_v33 = vpack.c.bf16 %v606_v32, %v605_v31  ;;  %v587_v38 = vld [vmem:[#allocation9 + $0x28] sm:$0xff]  ;;  %v1269_v39 = vpack.c.bf16 %v608_v36, %v607_v34  ;;  %v609_v40 = vld [vmem:[#allocation9 + $0xb0] sm:$0xff]  ;;  %v610_v41 = vld [vmem:[#allocation9 + $0xb8] sm:$0xff] }
  0x4b   :  { %1249 = vmatpush3.bf16.msra.mxu1 %v1248_v47  ;;  %1238 = vmatprep.subr.bf16.mxu0 %v1455_v0  ;;  %v1299_v42 = vpack.c.bf16 %v587_v38, %v586_v37  ;;  %v588_v43 = vld [vmem:[#allocation9 + $0x30] sm:$0xff]  ;;  %v589_v44 = vld [vmem:[#allocation9 + $0x38] sm:$0xff]  ;;  %v1272_v45 = vpack.c.bf16 %v610_v41, %v609_v40  ;;  %v611_v46 = vld [vmem:[#allocation9 + $0xc0] sm:$0xff] }
  0x4c   :  { %1250 = vmatprep.subr.bf16.mxu1 %v1455_v0  ;;  %v612_v47 = vld [vmem:[#allocation9 + $0xc8] sm:$0xff]  ;;  %v1302_v48 = vpack.c.bf16 %v589_v44, %v588_v43  ;;  %v590_v49 = vld [vmem:[#allocation9 + $0x40] sm:$0xff]  ;;  %v1071_v32 = vld [vmem:[%s1749_s2] ss:$0 sm:$0xff] }
  0x4d   :  { %v591_v50 = vld [vmem:[#allocation9 + $0x48] sm:$0xff]  ;;  %v1275_v51 = vpack.c.bf16 %v612_v47, %v611_v46  ;;  %v594_v59 = vld [vmem:[#allocation9 + $0x60] sm:$0xff]  ;;  %v618_v34 = vld [vmem:[#allocation9 + $0xf8] sm:$0xff] }
  0x4e   :  { %1240 = vmatpush3.bf16.msra.mxu0 %v1239_v52  ;;  %v613_v52 = vld [vmem:[#allocation9 + $0xd0] sm:$0xff]  ;;  %v598_v38 = vld [vmem:[#allocation9 + $0x80] sm:$0xff]  ;;  %v620_v44 = vld [vmem:[#allocation9 + $0x108] sm:$0xff] }
  0x4f   :  { %1252 = vmatpush3.bf16.msra.mxu1 %v1251_v53  ;;  %1146 = vmatprep.subr.mxu0 %v1456_v1  ;;  %v614_v53 = vld [vmem:[#allocation9 + $0xd8] sm:$0xff]  ;;  %v619_v43 = vld [vmem:[#allocation9 + $0x100] sm:$0xff] }
  0x50   :  { %1179 = vmatprep.subr.mxu1 %v1456_v1 }
  0x52   :  { %1147 = vmatpush3.msra.mxu0 %v165_v54  ;;  %v1305_v54 = vpack.c.bf16 %v591_v50, %v590_v49 }
  0x53   :  { %1180 = vmatpush3.msra.mxu1 %v150_v55  ;;  %1253 = vmatprep.subr.bf16.mxu0 %v1455_v0  ;;  %v592_v55 = vld [vmem:[#allocation9 + $0x50] sm:$0xff] }
  0x54   :  { %1265 = vmatprep.subr.bf16.mxu1 %v1455_v0 }
  0xaf   :  { %v101_v56 = vpop.permute.xlu0 %100 }
  0xb0   :  { %107 = vst.msk [vmem:[#allocation2 + $0x1] sm:$0xff] %vm106_vm3, %v101_v56  ;;  %v593_v56 = vld [vmem:[#allocation9 + $0x58] sm:$0xff] }
  0xb1   :  { %v130_v57 = vpop.permute.xlu1 %129  ;;  %v1308_v58 = vpack.c.bf16 %v593_v56, %v592_v55 }
  0xb2   :  { %135 = vst.msk [vmem:[#allocation2 + $0x13] sm:$0xff] %vm106_vm3, %v130_v57  ;;  %v1278_v57 = vpack.c.bf16 %v614_v53, %v613_v52  ;;  %v621_v52 = vld [vmem:[#allocation9 + $0x110] sm:$0xff]  ;;  %v622_v53 = vld [vmem:[#allocation9 + $0x118] sm:$0xff] }
  0xb3   :  { %v103_v60 = vpop.permute.xlu0 %102 }
  0xb4   :  { %108 = vst.msk [vmem:[#allocation2 + $0x9] sm:$0xff] %vm106_vm3, %v103_v60  ;;  %v595_v60 = vld [vmem:[#allocation9 + $0x68] sm:$0xff] }
  0xb6   :  { %v132_v61 = vpop.permute.xlu1 %131 }
  0xb7   :  { %136 = vst.msk [vmem:[#allocation2 + $0x1b] sm:$0xff] %vm106_vm3, %v132_v61  ;;  %v151_v3 = vld [vmem:[#allocation2 + $0x1] sm:$0xff]  ;;  %v1311_v61 = vpack.c.bf16 %v595_v60, %v594_v59 }
  0xb8   :  { %v137_v4 = vld [vmem:[#allocation2] sm:$0xff]  ;;  %1149 = vmatmul.mubr.msk.f32.vlgmr.msra.gmra.mrb[0].mxu0 %vm62_vm0, %v151_v3 }
  0xb9   :  { %1182 = vmatmul.mubr.msk.f32.vlgmr.msra.gmra.mrb[0].mxu1 %vm62_vm0, %v137_v4  ;;  %1255 = vmatpush3.bf16.msra.mxu0 %v1254_v62  ;;  %v153_v10 = vld [vmem:[#allocation2 + $0x11] sm:$0xff] }
  0xba   :  { %1151 = vmatprep.mubr.msk.f32.mxu0 %vm1457_vm2, %v1456_v1  ;;  %1184 = vmatprep.mubr.msk.f32.mxu1 %vm1457_vm2, %v1456_v1  ;;  %v378_v23 = vld [vmem:[#allocation2 + $0x12] sm:$0xff] }
  0xbb   :  { %1256 = vmatprep.subr.bf16.mxu0 %v1455_v0  ;;  %v152_v8 = vld [vmem:[#allocation2 + $0x9] sm:$0xff]  ;;  %1267 = vmatpush1.bf16.msra.mxu1 %v1266_v33  ;;  %v617_v33 = vld [vmem:[#allocation9 + $0xf0] sm:$0xff] }
  0xbc   :  { %v138_v9 = vld [vmem:[#allocation2 + $0x8] sm:$0xff]  ;;  %1152 = vmatmul.mubr.msk.f32.gmra.mrb[2].mxu0 %vm62_vm0, %v152_v8  ;;  %v139_v14 = vld [vmem:[#allocation2 + $0x10] sm:$0xff]  ;;  %1268 = vmatprep.subr.bf16.mxu1 %v1455_v0  ;;  %v1284_v37 = vpack.c.bf16 %v618_v34, %v617_v33  ;;  %v866_v34 = vld [vmem:[#allocation9 + $0x130] sm:$0xff] }
  0xbd   :  { %1185 = vmatmul.mubr.msk.f32.gmra.mrb[2].mxu1 %vm62_vm0, %v138_v9  ;;  %1258 = vmatpush3.bf16.msra.mxu0 %v1257_v5  ;;  %v376_v21 = vld [vmem:[#allocation2 + $0x2] sm:$0xff]  ;;  %v377_v22 = vld [vmem:[#allocation2 + $0xa] sm:$0xff] }
  0xbe   :  { %1154 = vmatprep.mubr.msk.f32.mxu0 %vm1457_vm2, %v1456_v1  ;;  %1187 = vmatprep.mubr.msk.f32.mxu1 %vm1457_vm2, %v1456_v1  ;;  %v154_v16 = vld [vmem:[#allocation2 + $0x19] sm:$0xff]  ;;  %v155_v19 = vld [vmem:[#allocation2 + $0x21] sm:$0x3] }
  0xbf   :  { %1259 = vmatprep.subr.bf16.mxu0 %v1455_v0  ;;  %v140_v17 = vld [vmem:[#allocation2 + $0x18] sm:$0xff]  ;;  %v141_v20 = vld [vmem:[#allocation2 + $0x20] sm:$0x3]  ;;  %v380_v25 = vld [vmem:[#allocation2 + $0x22] sm:$0x3]  ;;  %1270 = vmatpush1.bf16.msra.mxu1 %v1269_v39 }
  0xc0   :  { %1155 = vmatmul.mubr.msk.f32.gmra.mrb[4].mxu0 %vm62_vm0, %v153_v10  ;;  %v379_v24 = vld [vmem:[#allocation2 + $0x1a] sm:$0xff]  ;;  %1271 = vmatprep.subr.bf16.mxu1 %v1455_v0 }
  0xc1   :  { %1188 = vmatmul.mubr.msk.f32.gmra.mrb[4].mxu1 %vm62_vm0, %v139_v14  ;;  %1261 = vmatpush3.bf16.msra.mxu0 %v1260_v11  ;;  %v599_v39 = vld [vmem:[#allocation9 + $0x88] sm:$0xff] }
  0xc2   :  { %1157 = vmatprep.mubr.msk.f32.mxu0 %vm1457_vm2, %v1456_v1  ;;  %1190 = vmatprep.mubr.msk.f32.mxu1 %vm1457_vm2, %v1456_v1  ;;  %v1317_v40 = vpack.c.bf16 %v599_v39, %v598_v38 }
  0xc3   :  { %1262 = vmatprep.subr.bf16.mxu0 %v1455_v0  ;;  %1273 = vmatpush1.bf16.msra.mxu1 %v1272_v45 }
  0xc4   :  { %1158 = vmatmul.mubr.msk.f32.gmra.mrb[6].mxu0 %vm62_vm0, %v154_v16  ;;  %1274 = vmatprep.subr.bf16.mxu1 %v1455_v0 }
  0xc5   :  { %1191 = vmatmul.mubr.msk.f32.gmra.mrb[6].mxu1 %vm62_vm0, %v140_v17  ;;  %1264 = vmatpush3.bf16.msra.mxu0 %v1263_v15 }
  0xc6   :  { %1160 = vmatprep.mubr.msk.f32.mxu0 %vm1457_vm2, %v1456_v1  ;;  %1193 = vmatprep.mubr.msk.f32.mxu1 %vm1457_vm2, %v1456_v1 }
  0xc7   :  { %1212 = vmatprep.subr.mxu0 %v1456_v1  ;;  %1276 = vmatpush1.bf16.msra.mxu1 %v1275_v51 }
  0xc8   :  { %1161 = vmatmul.mubr.msk.f32.gmra.mrb[8].mxu0 %vm62_vm0, %v155_v19  ;;  %1277 = vmatprep.subr.bf16.mxu1 %v1455_v0 }
  0xc9   :  { %1194 = vmatmul.mubr.msk.f32.gmra.mrb[8].mxu1 %vm62_vm0, %v141_v20  ;;  %1213 = vmatpush3.msra.mxu0 %v390_v18 }
  0xca   :  { %1214 = vmatprep.mubr.msk.f32.mxu0 %vm1457_vm2, %v1456_v1  ;;  %1292 = vmatprep.subr.bf16.mxu0 %v1455_v0 }
  0xcb   :  { %1279 = vmatpush1.bf16.msra.mxu1 %v1278_v57  ;;  %v1290_v57 = vpack.c.bf16 %v622_v53, %v621_v52  ;;  %v870_v53 = vld [vmem:[#allocation9 + $0x150] sm:$0xff] }
  0xcc   :  { %1215 = vmatmul.mubr.msk.f32.vlgmr.msra.gmra.mrb[10].mxu0 %vm62_vm0, %v376_v21  ;;  %1280 = vmatprep.subr.bf16.mxu1 %v1455_v0 }
  0xcd   :  { %1217 = vmatprep.mubr.msk.f32.mxu0 %vm1457_vm2, %v1456_v1  ;;  %1294 = vmatpush1.bf16.msra.mxu0 %v1293_v29  ;;  %v597_v29 = vld [vmem:[#allocation9 + $0x78] sm:$0xff] }
  0xce   :  { %1295 = vmatprep.subr.bf16.mxu0 %v1455_v0 }
  0xd0   :  { %1218 = vmatmul.mubr.msk.f32.gmra.mrb[12].mxu0 %vm62_vm0, %v377_v22  ;;  %v615_v22 = vld [vmem:[#allocation9 + $0xe0] sm:$0xff] }
  0xd1   :  { %1220 = vmatprep.mubr.msk.f32.mxu0 %vm1457_vm2, %v1456_v1  ;;  %1297 = vmatpush1.bf16.msra.mxu0 %v1296_v35 }
  0xd2   :  { %1298 = vmatprep.subr.bf16.mxu0 %v1455_v0 }
  0xd4   :  { %1221 = vmatmul.mubr.msk.f32.gmra.mrb[14].mxu0 %vm62_vm0, %v378_v23  ;;  %v616_v23 = vld [vmem:[#allocation9 + $0xe8] sm:$0xff] }
  0xd5   :  { %1223 = vmatprep.mubr.msk.f32.mxu0 %vm1457_vm2, %v1456_v1  ;;  %1300 = vmatpush1.bf16.msra.mxu0 %v1299_v42  ;;  %v1281_v28 = vpack.c.bf16 %v616_v23, %v615_v22  ;;  %v864_v22 = vld [vmem:[#allocation9 + $0x120] sm:$0xff]  ;;  %v865_v23 = vld [vmem:[#allocation9 + $0x128] sm:$0xff] }
  0xd6   :  { %1301 = vmatprep.subr.bf16.mxu0 %v1455_v0 }
  0xd7   :  { %1282 = vmatpush1.bf16.msra.mxu1 %v1281_v28 }
  0xd8   :  { %1224 = vmatmul.mubr.msk.f32.gmra.mrb[16].mxu0 %vm62_vm0, %v379_v24  ;;  %v596_v24 = vld [vmem:[#allocation9 + $0x70] sm:$0xff]  ;;  %1283 = vmatprep.subr.bf16.mxu1 %v1455_v0 }
  0xd9   :  { %1226 = vmatprep.mubr.msk.f32.mxu0 %vm1457_vm2, %v1456_v1  ;;  %1303 = vmatpush1.bf16.msra.mxu0 %v1302_v48  ;;  %v1314_v30 = vpack.c.bf16 %v597_v29, %v596_v24  ;;  %v1287_v48 = vpack.c.bf16 %v620_v44, %v619_v43  ;;  %v868_v44 = vld [vmem:[#allocation9 + $0x140] sm:$0xff]  ;;  %vm886_vm2 = vcmask 1045504  }
  0xda   :  { %1304 = vmatprep.subr.bf16.mxu0 %v1455_v0 }
  0xdb   :  { %1285 = vmatpush1.bf16.msra.mxu1 %v1284_v37 }
  0xdc   :  { %1227 = vmatmul.mubr.msk.f32.gmra.mrb[18].mxu0 %vm62_vm0, %v380_v25  ;;  %1286 = vmatprep.subr.bf16.mxu1 %v1455_v0  ;;  %vm568_vm0 = vcmask 1042496  }
  0xdd   :  { %1306 = vmatpush1.bf16.msra.mxu0 %v1305_v54 }
  0xde   :  { %1307 = vmatprep.subr.bf16.mxu0 %v1455_v0 }
  0xdf   :  { %1288 = vmatpush1.bf16.msra.mxu1 %v1287_v48 }
  0xe0   :  { %1289 = vmatprep.subr.bf16.mxu1 %v1455_v0 }
  0xe1   :  { %1309 = vmatpush1.bf16.msra.mxu0 %v1308_v58 }
  0xe2   :  { %1310 = vmatprep.subr.bf16.mxu0 %v1455_v0 }
  0xe3   :  { %1291 = vmatpush1.bf16.msra.mxu1 %v1290_v57 }
  0xe4   :  { %1319 = vmatprep.subr.bf16.mxu1 %v1455_v0 }
  0xe5   :  { %1312 = vmatpush1.bf16.msra.mxu0 %v1311_v61 }
  0xe6   :  { %1313 = vmatprep.subr.bf16.mxu0 %v1455_v0 }
  0xe9   :  { %1315 = vmatpush1.bf16.msra.mxu0 %v1314_v30 }
  0xea   :  { %1316 = vmatprep.subr.bf16.mxu0 %v1455_v0 }
  0xed   :  { %1318 = vmatpush1.bf16.msra.mxu0 %v1317_v40 }
 0x18b   :  { %v247_v62 = vpop.f32.mrb[0].mxu0 }
 0x18c   :  { %v352_v63 = vpop.f32.mrb[0].mxu1  ;;  %v1150_v3 = vpop.f32.mrb[1].mxu0 }
 0x18d   :  { %v353_v2 = vadd.f32 %v352_v63, %v247_v62  ;;  %v1183_v4 = vpop.f32.mrb[1].mxu1 }
 0x18f   :  { %v252_v5 = vpop.f32.mrb[2].mxu0 }
 0x190   :  { %v357_v6 = vpop.f32.mrb[2].mxu1  ;;  %v1153_v8 = vpop.f32.mrb[3].mxu0 }
 0x191   :  { %v358_v7 = vadd.f32 %v357_v6, %v252_v5  ;;  %v1186_v9 = vpop.f32.mrb[3].mxu1 }
 0x193   :  { %v257_v10 = vpop.f32.mrb[4].mxu0 }
 0x194   :  { %v362_v11 = vpop.f32.mrb[4].mxu1  ;;  %v1156_v13 = vpop.f32.mrb[5].mxu0 }
 0x195   :  { %v363_v12 = vadd.f32 %v362_v11, %v257_v10  ;;  %v1189_v14 = vpop.f32.mrb[5].mxu1 }
 0x197   :  { %v262_v15 = vpop.f32.mrb[6].mxu0 }
 0x198   :  { %v367_v16 = vpop.f32.mrb[6].mxu1  ;;  %v1159_v18 = vpop.f32.mrb[7].mxu0 }
 0x199   :  { %v368_v17 = vadd.f32 %v367_v16, %v262_v15  ;;  %v1192_v19 = vpop.f32.mrb[7].mxu1 }
 0x19b   :  { %v267_v20 = vpop.f32.mrb[8].mxu0 }
 0x19c   :  { %v372_v21 = vpop.f32.mrb[8].mxu1  ;;  %v1162_v26 = vpop.f32.mrb[9].mxu0 }
 0x19d   :  { %v373_v25 = vadd.f32 %v372_v21, %v267_v20  ;;  %v1195_v27 = vpop.f32.mrb[9].mxu1 }
 0x19f   :  { %v472_v31 = vpop.f32.mrb[10].mxu0 }
 0x1a0   :  { %v496_v35 = vadd.f32 %v472_v31, %v353_v2  ;;  %v1216_v36 = vpop.f32.mrb[11].mxu0  ;;  %v1320_v31 = vpack.c.bf16 %v865_v23, %v864_v22 }
 0x1a2   :  { %v508_v41 = vadd.f32 %v1071_v32, %v496_v35  ;;  %v867_v35 = vld [vmem:[#allocation9 + $0x138] sm:$0xff] }
 0x1a3   :  { %v477_v42 = vpop.f32.mrb[12].mxu0 }
 0x1a4   :  { %v497_v45 = vadd.f32 %v477_v42, %v358_v7  ;;  %v1219_v46 = vpop.f32.mrb[13].mxu0  ;;  %v513_v47 = vmax.f32 %v508_v41, 0.0  ;;  %v1323_v41 = vpack.c.bf16 %v867_v35, %v866_v34 }
 0x1a6   :  { %v521_v49 = vrot.slane %v513_v47, 7  ;;  %v509_v50 = vadd.f32 %v1071_v32, %v497_v45  ;;  %v869_v45 = vld [vmem:[#allocation9 + $0x148] sm:$0xff] }
 0x1a7   :  { %v482_v51 = vpop.f32.mrb[14].mxu0 }
 0x1a8   :  { %v498_v54 = vadd.f32 %v482_v51, %v363_v12  ;;  %v1222_v55 = vpop.f32.mrb[15].mxu0  ;;  %524 = vrot.lane.b32.xlu0 %v521_v49, %s1453_s6  ;;  %v514_v56 = vmax.f32 %v509_v50, 0.0  ;;  %v1326_v50 = vpack.c.bf16 %v869_v45, %v868_v44 }
 0x1aa   :  { %v522_v58 = vrot.slane %v514_v56, 7  ;;  %v510_v59 = vadd.f32 %v1071_v32, %v498_v54  ;;  %v871_v54 = vld [vmem:[#allocation9 + $0x158] sm:$0xff] }
 0x1ab   :  { %v487_v60 = vpop.f32.mrb[16].mxu0 }
 0x1ac   :  { %v499_v61 = vadd.f32 %v487_v60, %v368_v17  ;;  %v1225_v62 = vpop.f32.mrb[17].mxu0  ;;  %528 = vrot.lane.b32.xlu0 %v522_v58, %s1453_s6  ;;  %v523_v63 = vsel %vm520_vm5, %v521_v49, %v522_v58  ;;  %v515_v2 = vmax.f32 %v510_v59, 0.0 }
 0x1ad   :  { %526 = vrot.lane.b32.xlu1 %v523_v63, %s1453_s6  ;;  %v872_v63 = vld [vmem:[#allocation9 + $0x160] sm:$0xff] }
 0x1ae   :  { %v511_v3 = vadd.f32 %v1071_v32, %v499_v61  ;;  %v548_v4 = vrot.slane %v515_v2, 7  ;;  %v1329_v61 = vpack.c.bf16 %v871_v54, %v870_v53  ;;  %v873_v2 = vld [vmem:[#allocation9 + $0x168] sm:$0xff] }
 0x1af   :  { %v492_v5 = vpop.f32.mrb[18].mxu0 }
 0x1b0   :  { %v516_v6 = vmax.f32 %v511_v3, 0.0  ;;  %v500_v7 = vadd.f32 %v492_v5, %v373_v25  ;;  %v1228_v8 = vpop.f32.mrb[19].mxu0 }
 0x1b1   :  { %553 = vrot.lane.b32.xlu1 %v548_v4, %s1453_s6  ;;  %v874_v8 = vld [vmem:[#allocation9 + $0x170] sm:$0xff] }
 0x1b2   :  { %v549_v9 = vrot.slane %v516_v6, 7  ;;  %v512_v10 = vadd.f32 %v1071_v32, %v500_v7  ;;  %v1332_v6 = vpack.c.bf16 %v873_v2, %v872_v63  ;;  %v1087_v63 = vld [vmem:[%s1751_s4] ss:$0 sm:$0xff]  ;;  %s1459_s4 = smov [#allocation10]  }
 0x1b3   :  { %s1043_s9 = sshll.u32 %s1459_s4, 4  ;;  %s1044_s9 = int_to_ptr.vmem [resolvable:$true] %s1043_s9 }
 0x1b4   :  { %v517_v11 = vmax.f32 %v512_v10, 0.0  ;;  %v550_v12 = vsel %vm520_vm5, %v548_v4, %v549_v9  ;;  %s1422_s10 = scalar_lea.vmem %s1044_s9, 512  ;;  %p1427_p11 = scmp.lt.s32.totalorder %s1044_s9, %s1044_s9 }
 0x1b5   :  { %555 = vrot.lane.b32.xlu0 %v550_v12, %s1453_s6  ;;  %v876_v12 = vld [vmem:[#allocation9 + $0x180] sm:$0xff]  ;;  %p1423_p10 = scmp.ne.s32.totalorder %s1044_s9, %s1422_s10  ;;  %p1428_p12 = scmp.lt.s32.totalorder %s1422_s10, %s1422_s10 }
 0x1b6   :  { %v551_v13 = vrot.slane %v517_v11, 7 }
 0x1b7   :  { %p1429_p13 = por %p1428_p12, %p1427_p11 }
 0x1b8   :  { %v552_v1 = vsel %vm520_vm5, %v549_v9, %v551_v13  ;;  %v875_v9 = vld [vmem:[#allocation9 + $0x178] sm:$0xff]  ;;  %v877_v13 = vld [vmem:[#allocation9 + $0x188] sm:$0xff] }
 0x1b9   :  { %557 = vrot.lane.b32.xlu1 %v552_v1, %s1453_s6  ;;  %v1335_v11 = vpack.c.bf16 %v875_v9, %v874_v8  ;;  %v1338_v1 = vpack.c.bf16 %v877_v13, %v876_v12  ;;  %p1430_p0 = pnand %p1429_p13, %p1423_p10 }
 0x21a   :  { %v525_v14 = vpop.permute.xlu0 %524 }
 0x21b   :  { %534 = vst.msk [vmem:[#allocation3] sm:$0xfe] %vm533_vm7, %v525_v14 }
 0x21c   :  { %536 = vst.msk [vmem:[#allocation3 + $0x8] sm:$0xfe] %vm535_vm8, %v525_v14  ;;  %v878_v14 = vld [vmem:[#allocation9 + $0x190] sm:$0xff] }
 0x21e   :  { %v529_v15 = vpop.permute.xlu0 %528 }
 0x21f   :  { %542 = vst.msk [vmem:[#allocation3 + $0x20] sm:$0x1] %vm541_vm9, %v529_v15  ;;  %v527_v16 = vpop.permute.xlu1 %526 }
 0x220   :  { %544 = vst.msk [vmem:[#allocation3 + $0x28] sm:$0x1] %vm543_vm10, %v529_v15  ;;  %v879_v15 = vld [vmem:[#allocation9 + $0x198] sm:$0xff] }
 0x221   :  { %538 = vst.msk [vmem:[#allocation3 + $0x10] sm:$0xff] %vm537_vm11, %v527_v16 }
 0x222   :  { %540 = vst.msk [vmem:[#allocation3 + $0x18] sm:$0xff] %vm539_vm12, %v527_v16  ;;  %v572_v18 = vld [vmem:[#allocation3] sm:$0xff]  ;;  %v1341_v16 = vpack.c.bf16 %v879_v15, %v878_v14 }
 0x223   :  { %v573_v17 = vld [vmem:[#allocation3 + $0x8] sm:$0xff]  ;;  %v554_v19 = vpop.permute.xlu1 %553  ;;  %v600_v21 = vld [vmem:[#allocation3] sm:$0xfe] }
 0x224   :  { %1077 = vmatprep.mubr.msk.f32.mxu0 %vm70_vm4, %v573_v17  ;;  %563 = vst.msk [vmem:[#allocation3 + $0x20] sm:$0xf8] %vm562_vm13, %v554_v19  ;;  %v601_v20 = vld [vmem:[#allocation3 + $0x8] sm:$0xfe]  ;;  %v634_v30 = vrot.slane %v600_v21, 1 }
 0x225   :  { %565 = vst.msk [vmem:[#allocation3 + $0x28] sm:$0xf8] %vm564_vm14, %v554_v19  ;;  %834 = vmatmul.mubr.f32.vlgmr.msra.gmra.mrb[20].mxu0 %v572_v18  ;;  %v637_v29 = vrot.slane %v601_v20, 1  ;;  %v860_v4 = vld [vmem:[#allocation3 + $0x8] sm:$0xfc]  ;;  %v881_v18 = vld [vmem:[#allocation9 + $0x1a8] sm:$0xff] }
 0x226   :  { %v890_v7 = vrot.slane %v860_v4, 2  ;;  %v880_v17 = vld [vmem:[#allocation9 + $0x1a0] sm:$0xff]  ;;  %v859_v20 = vld [vmem:[#allocation3] sm:$0xfc] }
 0x227   :  { %v556_v24 = vpop.permute.xlu0 %555  ;;  %v1344_v19 = vpack.c.bf16 %v881_v18, %v880_v17  ;;  %v887_v23 = vrot.slane %v859_v20, 2 }
 0x228   :  { %v1661_v26 = vld [vmem:[#allocation3 + $0x10] sm:$0xff]  ;;  %566 = vst.msk [vmem:[#allocation3 + $0x30] sm:$0xff] %vm537_vm11, %v556_v24 }
 0x229   :  { %v1659_v25 = vld [vmem:[#allocation3 + $0x18] sm:$0xff]  ;;  %567 = vst.msk [vmem:[#allocation3 + $0x38] sm:$0xff] %vm539_vm12, %v556_v24  ;;  %v635_v28 = vrot.slane %v1661_v26, 1  ;;  %v888_v21 = vrot.slane %v1661_v26, 2 }
 0x22a   :  { %v638_v27 = vrot.slane %v1659_v25, 1  ;;  %1078 = vmatprep.mubr.msk.f32.mxu0 %vm70_vm4, %v1659_v25  ;;  %v891_v5 = vrot.slane %v1659_v25, 2 }
 0x22b   :  { %839 = vmatmul.mubr.f32.gmra.mrb[22].mxu0 %v1661_v26  ;;  %v636_v33 = vsel %vm633_vm15, %v634_v30, %v635_v28  ;;  %v558_v36 = vpop.permute.xlu1 %557  ;;  %v1675_v38 = vld [vmem:[#allocation3 + $0x20] sm:$0xff]  ;;  %v889_v25 = vsel %vm886_vm2, %v887_v23, %v888_v21 }
 0x22c   :  { %v639_v32 = vsel %vm633_vm15, %v637_v29, %v638_v27  ;;  %v1673_v37 = vld [vmem:[#allocation3 + $0x28] sm:$0xff]  ;;  %569 = vst.msk [vmem:[#allocation3 + $0x40] sm:$0x7] %vm568_vm0, %v558_v36  ;;  %v640_v40 = vrot.slane %v1675_v38, 1  ;;  %v892_v10 = vsel %vm886_vm2, %v890_v7, %v891_v5  ;;  %v893_v24 = vrot.slane %v1675_v38, 2 }
 0x22d   :  { %1072 = vmatprep.mubr.msk.f32.mxu1 %vm70_vm4, %v639_v32  ;;  %571 = vst.msk [vmem:[#allocation3 + $0x48] sm:$0x7] %vm570_vm1, %v558_v36  ;;  %v642_v39 = vrot.slane %v1673_v37, 1  ;;  %1079 = vmatprep.mubr.msk.f32.mxu0 %vm70_vm4, %v1673_v37  ;;  %v895_v22 = vrot.slane %v1673_v37, 2 }
 0x22e   :  { %732 = vmatmul.mubr.f32.vlgmr.msra.gmra.mrb[10].mxu1 %v636_v33  ;;  %v641_v43 = vsel %vm633_vm15, %v635_v28, %v640_v40  ;;  %v894_v26 = vsel %vm886_vm2, %v888_v21, %v893_v24 }
 0x22f   :  { %1321 = vmatpush1.bf16.msra.mxu1 %v1320_v31  ;;  %844 = vmatmul.mubr.f32.gmra.mrb[24].mxu0 %v1675_v38  ;;  %v643_v42 = vsel %vm633_vm15, %v638_v27, %v642_v39  ;;  %v1688_v47 = vld [vmem:[#allocation3 + $0x30] sm:$0xff]  ;;  %v896_v28 = vsel %vm886_vm2, %v891_v5, %v895_v22 }
 0x230   :  { %1322 = vmatprep.subr.bf16.mxu1 %v1455_v0  ;;  %1073 = vmatprep.mubr.msk.f32.mxu1 %vm70_vm4, %v643_v42  ;;  %v1686_v46 = vld [vmem:[#allocation3 + $0x38] sm:$0xff]  ;;  %v644_v49 = vrot.slane %v1688_v47, 1 }
 0x231   :  { %v646_v48 = vrot.slane %v1686_v46, 1  ;;  %1080 = vmatprep.mubr.msk.f32.mxu0 %vm70_vm4, %v1686_v46  ;;  %v899_v27 = vrot.slane %v1686_v46, 2 }
 0x232   :  { %737 = vmatmul.mubr.f32.gmra.mrb[12].mxu1 %v641_v43  ;;  %v645_v52 = vsel %vm633_vm15, %v640_v40, %v644_v49 }
 0x233   :  { %1324 = vmatpush1.bf16.msra.mxu1 %v1323_v41  ;;  %849 = vmatmul.mubr.f32.gmra.mrb[26].mxu0 %v1688_v47  ;;  %v647_v51 = vsel %vm633_vm15, %v642_v39, %v646_v48  ;;  %v580_v56 = vld [vmem:[#allocation3 + $0x40] sm:$0x3]  ;;  %v900_v30 = vsel %vm886_vm2, %v895_v22, %v899_v27 }
 0x234   :  { %1325 = vmatprep.subr.bf16.mxu1 %v1455_v0  ;;  %1074 = vmatprep.mubr.msk.f32.mxu1 %vm70_vm4, %v647_v51  ;;  %v581_v55 = vld [vmem:[#allocation3 + $0x48] sm:$0x3]  ;;  %v602_v59 = vld [vmem:[#allocation3 + $0x40] sm:$0x7] }
 0x235   :  { %v603_v57 = vld [vmem:[#allocation3 + $0x48] sm:$0x7]  ;;  %1081 = vmatprep.mubr.msk.f32.mxu0 %vm70_vm4, %v581_v55  ;;  %v648_v60 = vrot.slane %v602_v59, 1  ;;  %v861_v32 = vld [vmem:[#allocation3 + $0x40] sm:$0xf] }
 0x236   :  { %742 = vmatmul.mubr.f32.gmra.mrb[14].mxu1 %v645_v52  ;;  %v650_v58 = vrot.slane %v603_v57, 1  ;;  %v862_v29 = vld [vmem:[#allocation3 + $0x48] sm:$0xf]  ;;  %v901_v34 = vrot.slane %v861_v32, 2 }
 0x237   :  { %1327 = vmatpush1.bf16.msra.mxu1 %v1326_v50  ;;  %854 = vmatmul.mubr.f32.gmra.mrb[28].mxu0 %v580_v56  ;;  %v649_v3 = vsel %vm633_vm15, %v644_v49, %v648_v60  ;;  %v903_v31 = vrot.slane %v862_v29, 2 }
 0x238   :  { %v651_v62 = vsel %vm633_vm15, %v646_v48, %v650_v58  ;;  %1328 = vmatprep.subr.bf16.mxu1 %v1455_v0 }
 0x239   :  { %1075 = vmatprep.mubr.msk.f32.mxu1 %vm70_vm4, %v651_v62  ;;  %v904_v35 = vsel %vm886_vm2, %v899_v27, %v903_v31 }
 0x23a   :  { %747 = vmatmul.mubr.f32.gmra.mrb[16].mxu1 %v649_v3 }
 0x23b   :  { %1330 = vmatpush1.bf16.msra.mxu1 %v1329_v61  ;;  %1076 = vmatprep.mubr.msk.f32.mxu1 %vm70_vm4, %v650_v58 }
 0x23c   :  { %1331 = vmatprep.subr.bf16.mxu1 %v1455_v0 }
 0x23e   :  { %752 = vmatmul.mubr.f32.gmra.mrb[18].mxu1 %v648_v60 }
 0x23f   :  { %1333 = vmatpush1.bf16.msra.mxu1 %v1332_v6  ;;  %1082 = vmatprep.mubr.msk.f32.mxu1 %vm70_vm4, %v892_v10 }
 0x240   :  { %1334 = vmatprep.subr.bf16.mxu1 %v1455_v0 }
 0x243   :  { %1336 = vmatpush1.bf16.msra.mxu1 %v1335_v11 }
 0x244   :  { %1337 = vmatprep.subr.bf16.mxu1 %v1455_v0 }
 0x247   :  { %1339 = vmatpush1.bf16.msra.mxu1 %v1338_v1 }
 0x248   :  { %1340 = vmatprep.subr.bf16.mxu1 %v1455_v0 }
 0x24b   :  { %1342 = vmatpush1.bf16.msra.mxu1 %v1341_v16 }
 0x24c   :  { %1343 = vmatprep.subr.bf16.mxu1 %v1455_v0  ;;  %v897_v0 = vrot.slane %v1688_v47, 2 }
 0x24e   :  { %v898_v33 = vsel %vm886_vm2, %v893_v24, %v897_v0  ;;  %v902_v36 = vsel %vm886_vm2, %v897_v0, %v901_v34 }
 0x24f   :  { %1345 = vmatpush1.bf16.msra.mxu1 %v1344_v19 }
 0x252   :  { %985 = vmatmul.mubr.f32.vlgmr.msra.gmra.mrb[20].mxu1 %v889_v25 }
 0x253   :  { %1083 = vmatprep.mubr.msk.f32.mxu1 %vm70_vm4, %v896_v28 }
 0x256   :  { %990 = vmatmul.mubr.f32.gmra.mrb[22].mxu1 %v894_v26 }
 0x257   :  { %1084 = vmatprep.mubr.msk.f32.mxu1 %vm70_vm4, %v900_v30 }
 0x25a   :  { %995 = vmatmul.mubr.f32.gmra.mrb[24].mxu1 %v898_v33 }
 0x25b   :  { %1085 = vmatprep.mubr.msk.f32.mxu1 %vm70_vm4, %v904_v35 }
 0x25e   :  { %1000 = vmatmul.mubr.f32.gmra.mrb[26].mxu1 %v902_v36 }
 0x25f   :  { %1086 = vmatprep.mubr.msk.f32.mxu1 %vm70_vm4, %v903_v31 }
 0x262   :  { %1005 = vmatmul.mubr.f32.gmra.mrb[28].mxu1 %v901_v34 }
 0x2f8   :  { %v835_v37 = vpop.f32.mrb[20].mxu0 }
 0x2f9   :  { %v837_v38 = vpop.f32.mrb[21].mxu0 }
 0x2fe   :  { %v840_v39 = vpop.f32.mrb[22].mxu0 }
 0x2ff   :  { %v842_v40 = vpop.f32.mrb[23].mxu0 }
 0x301   :  { %v733_v41 = vpop.f32.mrb[10].mxu1 }
 0x302   :  { %v836_v42 = vadd.f32 %v835_v37, %v733_v41  ;;  %v735_v43 = vpop.f32.mrb[11].mxu1  ;;  %v845_v44 = vpop.f32.mrb[24].mxu0 }
 0x303   :  { %v847_v45 = vpop.f32.mrb[25].mxu0 }
 0x305   :  { %v738_v46 = vpop.f32.mrb[12].mxu1 }
 0x306   :  { %v841_v47 = vadd.f32 %v840_v39, %v738_v46  ;;  %v740_v48 = vpop.f32.mrb[13].mxu1  ;;  %v850_v49 = vpop.f32.mrb[26].mxu0 }
 0x307   :  { %v852_v50 = vpop.f32.mrb[27].mxu0 }
 0x309   :  { %v743_v51 = vpop.f32.mrb[14].mxu1 }
 0x30a   :  { %v846_v52 = vadd.f32 %v845_v44, %v743_v51  ;;  %v745_v53 = vpop.f32.mrb[15].mxu1  ;;  %v855_v54 = vpop.f32.mrb[28].mxu0 }
 0x30b   :  { %v857_v55 = vpop.f32.mrb[29].mxu0 }
 0x30d   :  { %v748_v56 = vpop.f32.mrb[16].mxu1 }
 0x30e   :  { %v851_v57 = vadd.f32 %v850_v49, %v748_v56  ;;  %v750_v58 = vpop.f32.mrb[17].mxu1 }
 0x311   :  { %v753_v59 = vpop.f32.mrb[18].mxu1 }
 0x312   :  { %v856_v60 = vadd.f32 %v855_v54, %v753_v59  ;;  %v755_v61 = vpop.f32.mrb[19].mxu1 }
 0x325   :  { %v986_v62 = vpop.f32.mrb[20].mxu1 }
 0x326   :  { %v1010_v2 = vadd.f32 %v986_v62, %v836_v42  ;;  %v988_v3 = vpop.f32.mrb[21].mxu1 }
 0x328   :  { %v1022_v4 = vadd.f32 %v1087_v63, %v1010_v2 }
 0x329   :  { %v991_v5 = vpop.f32.mrb[22].mxu1 }
 0x32a   :  { %v1027_v6 = vmax.f32 %v1022_v4, 0.0  ;;  %v1011_v7 = vadd.f32 %v991_v5, %v841_v47  ;;  %v993_v8 = vpop.f32.mrb[23].mxu1 }
 0x32c   :  { %1032 = vst [vmem:[#allocation10] sm:$0xff] %v1027_v6  ;;  %v1023_v9 = vadd.f32 %v1087_v63, %v1011_v7 }
 0x32d   :  { %v996_v10 = vpop.f32.mrb[24].mxu1 }
 0x32e   :  { %v1028_v11 = vmax.f32 %v1023_v9, 0.0  ;;  %v1012_v12 = vadd.f32 %v996_v10, %v846_v52  ;;  %v998_v13 = vpop.f32.mrb[25].mxu1 }
 0x330   :  { %1033 = vst [vmem:[#allocation10 + $0x8] sm:$0xff] %v1028_v11  ;;  %v1024_v1 = vadd.f32 %v1087_v63, %v1012_v12 }
 0x331   :  { %v1001_v14 = vpop.f32.mrb[26].mxu1 }
 0x332   :  { %v1029_v15 = vmax.f32 %v1024_v1, 0.0  ;;  %v1013_v16 = vadd.f32 %v1001_v14, %v851_v57  ;;  %v1003_v17 = vpop.f32.mrb[27].mxu1 }
 0x334   :  { %1035 = vst [vmem:[#allocation10 + $0xe] sm:$0xfc] %v1029_v15  ;;  %v1025_v18 = vadd.f32 %v1087_v63, %v1013_v16 }
 0x335   :  { %v1006_v19 = vpop.f32.mrb[28].mxu1 }
 0x336   :  { %v1030_v20 = vmax.f32 %v1025_v18, 0.0  ;;  %v1014_v21 = vadd.f32 %v1006_v19, %v856_v60  ;;  %v1008_v22 = vpop.f32.mrb[29].mxu1 }
 0x338   :  { %1036 = vst [vmem:[#allocation10 + $0x16] sm:$0xff] %v1030_v20  ;;  %v1026_v23 = vadd.f32 %v1087_v63, %v1014_v21 }
 0x33a   :  { %v1031_v24 = vmax.f32 %v1026_v23, 0.0 }
 0x33c   :  { %1037 = vst [vmem:[#allocation10 + $0x1e] sm:$0x3] %v1031_v24 }
 0x33d   :  { %1433 = shalt.err (!%p1430_p0)
}
 0x33e   :  { %s1434_s13 = scalar_lea.hbm %s1752_s5, 512 }
 0x33f   :  { %p1435_p1 = scmp.ne.s32.totalorder %s1752_s5, %s1434_s13  ;;  %p1438_p2 = scmp.lt.u32.totalorder %s1434_s13, %s1752_s5 }
 0x341   :  { %p1440_p3 = pnand %p1438_p2, %p1435_p1 }
 0x343   :  { %1443 = shalt.err (!%p1440_p3)
}
 0x344   :  { %1049 = dma.vmem_to_hbm [thread:$0]  %s1044_s9, 512, %s1752_s5, [#allocation6], %s1452_s30, %s1452_s30, %s1453_s6  }
 0x345   :  { %1448 = dma.done.wait [#allocation6], 512  }
 0x346   :  { %1449 = vsyncadd [#allocation6], 4294966784 }
 0x347   :  { %1053 = vsyncpa [#allocation5], 1 }
 0x348   :  { %1054 = vsyncpa [#allocation8], 1 }
 0x349   :  { %1055 = vsyncpa [#allocation6], 1 }

</bundles_post_ra>
